<compile_context>
chip_gen: v6e
topology: v6e:2x2x1
jax: 0.10.0
libtpu: 0.0.40
codegen_flags: <defaults>
</compile_context>

<pallas_src>
from itertools import combinations

import numpy as np
import jax
import jax.numpy as jnp
from jax import lax
from jax.experimental import pallas as pl
from jax.experimental.pallas import tpu as pltpu

MARGIN = 1.0          # matches `margin = 1` in the reference module
TRIPLET_BLOCK = 512   # triplets per grid step (multiple of 128 -> lane dense)


# TODO(synk): the combinatorial, data-dependent triplet *selection*
# (AllTripletSelector.get_triplets) has no fixed-shape Pallas equivalent; it
# stays on host and only integer indices are fed to the kernel.
def all_triplet_selector(labels: np.ndarray) -> np.ndarray:
    labels = np.asarray(labels)
    triplets = []
    for label in sorted(set(labels.tolist())):
        label_mask = labels == label
        label_indices = np.where(label_mask)[0]
        if len(label_indices) < 2:
            continue
        negative_indices = np.where(np.logical_not(label_mask))[0]
        anchor_positives = list(combinations(label_indices, 2))
        triplets += [
            [int(ap[0]), int(ap[1]), int(neg)]
            for ap in anchor_positives
            for neg in negative_indices
        ]
    return np.asarray(triplets, dtype=np.int32)


def _triplet_loss_kernel(n_pad: int, tb: int, margin: float):
    def kernel(count_ref, idx_ref, emb_ref, out_ref, dmat_ref, acc_ref):
        # count_ref: (1,)  int32  SMEM (scalar prefetch): true triplet count T
        # idx_ref  : (3, tb) int32 VMEM tile of [anchor; positive; negative]
        # emb_ref  : (n_pad, D) f32 VMEM, resident across the grid
        # out_ref  : (1, 1) f32 output block, written only at finalize
        # dmat_ref : (n_pad, n_pad) f32 VMEM scratch: pairwise sq. distances
        # acc_ref  : (1, tb) f32 VMEM scratch: lane-dense partial sums
        i = pl.program_id(0)

        @pl.when(i == 0)
        def _init():
            e = emb_ref[...]                                   # (n_pad, D)
            # Gram matrix on the MXU with f32 accumulation.
            g = lax.dot_general(e, e, (((1,), (1,)), ((), ())),
                                preferred_element_type=jnp.float32)
            ri = lax.broadcasted_iota(jnp.int32, (n_pad, n_pad), 0)
            ci = lax.broadcasted_iota(jnp.int32, (n_pad, n_pad), 1)
            gd = g * (ri == ci).astype(jnp.float32)            # keep diagonal
            nrm_col = jnp.sum(gd, axis=1, keepdims=True)       # (n_pad, 1)
            nrm_row = jnp.sum(gd, axis=0, keepdims=True)       # (1, n_pad)
            dmat_ref[...] = nrm_col + nrm_row - 2.0 * g        # ||e_i - e_j||^2
            acc_ref[...] = jnp.zeros_like(acc_ref)

        idx = idx_ref[...]                                     # (3, tb) int32
        a_row = idx[0:1, :]                                    # (1, tb)
        p_row = idx[1:2, :]
        n_row = idx[2:3, :]

        row_iota = lax.broadcasted_iota(jnp.int32, (n_pad, tb), 0)
        onehot_a = (row_iota == a_row).astype(jnp.float32)     # (n_pad, tb)
        sel_pn = ((row_iota == p_row).astype(jnp.float32)
                  - (row_iota == n_row).astype(jnp.float32))   # (n_pad, tb)

        # r[:, t] = dmat[:, a_t] == dmat[a_t, :] (symmetric) -- MXU row gather.
        r = jnp.dot(dmat_ref[...], onehot_a,
                    preferred_element_type=jnp.float32)        # (n_pad, tb)
        # diff[0, t] = dmat[a_t, p_t] - dmat[a_t, n_t] = ap_dist - an_dist
        diff = jnp.sum(r * sel_pn, axis=0, keepdims=True)      # (1, tb)

        t_global = i * tb + lax.broadcasted_iota(jnp.int32, (1, tb), 1)
        valid = (t_global < count_ref[0]).astype(jnp.float32)  # mask padded tail

        acc_ref[...] += jnp.maximum(diff + margin, 0.0) * valid

        @pl.when(i == pl.num_programs(0) - 1)
        def _finalize():
            total = jnp.sum(acc_ref[...], axis=1, keepdims=True)    # (1, 1)
            out_ref[...] = total / count_ref[0].astype(jnp.float32)  # mean

    return kernel


def online_triplet_loss(embeddings: jax.Array, labels) -> tuple[jax.Array, int]:
    """Returns (mean triplet loss, number of triplets) like the torch module."""
    labels_np = np.asarray(labels)
    triplets = all_triplet_selector(labels_np)                 # (T, 3) host-side
    num_triplets = int(triplets.shape[0])
    assert num_triplets > 0, "need at least one valid triplet"

    N, D = embeddings.shape
    n_pad = max(8, -(-N // 8) * 8)                             # sublane-align N
    tb = TRIPLET_BLOCK
    t_pad = -(-num_triplets // tb) * tb                        # bucketed T
    num_tiles = t_pad // tb

    # (3, T_pad) index table: rows = anchor / positive / negative; tail = 0 (masked).
    idx_np = np.zeros((3, t_pad), dtype=np.int32)
    idx_np[:, :num_triplets] = triplets.T

    emb = jnp.zeros((n_pad, D), jnp.float32).at[:N, :].set(
        embeddings.astype(jnp.float32))
    idx = jnp.asarray(idx_np)
    count = jnp.asarray([num_triplets], dtype=jnp.int32)

    kernel = _triplet_loss_kernel(n_pad, tb, MARGIN)
    out = pl.pallas_call(
        kernel,
        out_shape=jax.ShapeDtypeStruct((1, 1), jnp.float32),
        grid_spec=pltpu.PrefetchScalarGridSpec(
            num_scalar_prefetch=1,
            grid=(num_tiles,),
            in_specs=[
                pl.BlockSpec((3, tb), lambda i, cnt: (0, i)),      # index tiles
                pl.BlockSpec((n_pad, D), lambda i, cnt: (0, 0)),   # embeddings (resident)
            ],
            out_specs=pl.BlockSpec((1, 1), lambda i, cnt: (0, 0)),
            scratch_shapes=[
                pltpu.VMEM((n_pad, n_pad), jnp.float32),  # pairwise distance matrix
                pltpu.VMEM((1, tb), jnp.float32),         # lane-dense partial sums
            ],
        ),
        compiler_params=pltpu.CompilerParams(
            dimension_semantics=("arbitrary",),   # single reduction axis
        ),
    )(count, idx, emb)

    return out[0, 0], num_triplets


def _reference(embeddings_np: np.ndarray, labels_np: np.ndarray):
    triplets = all_triplet_selector(labels_np)
    a = embeddings_np[triplets[:, 0]]
    p = embeddings_np[triplets[:, 1]]
    n = embeddings_np[triplets[:, 2]]
    ap = ((a - p) ** 2).sum(1)
    an = ((a - n) ** 2).sum(1)
    losses = np.maximum(ap - an + MARGIN, 0.0)
    return losses.mean(), len(triplets)


if __name__ == "__main__":
    # Small deterministic example: batch N=8, embedding dim D=32, 2 classes.
    N, D = 8, 32
    key = jax.random.PRNGKey(0)
    embeddings = jax.random.normal(key, (N, D), dtype=jnp.float32)
    labels = np.array([0, 0, 0, 0, 1, 1, 1, 1], dtype=np.int32)

    loss, n_triplets = online_triplet_loss(embeddings, labels)
    loss = jax.block_until_ready(loss)

    ref_loss, ref_n = _reference(np.asarray(embeddings, dtype=np.float64), labels)
    assert n_triplets == ref_n, (n_triplets, ref_n)
    assert np.allclose(np.asarray(loss), ref_loss, rtol=1e-4, atol=1e-4), (
        float(loss), float(ref_loss))

    print("KERNEL_OK")
</pallas_src>

<mosaic_0001>
module attributes {stable_mosaic.version = 11 : i64} {
  func.func @kernel(%arg0: i32, %arg1: memref<1xi32, #tpu.memory_space<smem>>, %arg2: memref<3x512xi32, #tpu.memory_space<vmem>>, %arg3: memref<8x32xf32, #tpu.memory_space<vmem>>, %arg4: memref<1x1xf32, #tpu.memory_space<vmem>>, %arg5: memref<8x8xf32, #tpu.memory_space<vmem>>, %arg6: memref<1x512xf32, #tpu.memory_space<vmem>>) attributes {dimension_semantics = [#tpu.dimension_semantics<arbitrary>], iteration_bounds = array<i64: 1>, scalar_prefetch = 1 : i64, scratch_operands = 2 : i64, tpu.core_type = #tpu.core_type<tc>, window_params = [{transform_indices = @transform_0, window_bounds = array<i64: 3, 512>}, {pipeline_mode = #tpu.pipeline_mode<synchronous>, transform_indices = @transform_1, window_bounds = array<i64: 8, 32>}, {pipeline_mode = #tpu.pipeline_mode<synchronous>, transform_indices = @transform_2, window_bounds = array<i64: 1, 1>}]} {
    %c0_i32 = arith.constant 0 : i32
    %0 = arith.cmpi eq, %arg0, %c0_i32 : i32
    %1 = arith.extui %0 : i1 to i32
    %c0_i32_0 = arith.constant 0 : i32
    %2 = arith.cmpi ne, %1, %c0_i32_0 : i32
    scf.if %2 {
      %c0_14 = arith.constant 0 : index
      %c0_15 = arith.constant 0 : index
      %46 = vector.load %arg3[%c0_14, %c0_15] : memref<8x32xf32, #tpu.memory_space<vmem>>, vector<8x32xf32>
      %cst_16 = arith.constant dense<0.000000e+00> : vector<8x8xf32>
      %47 = tpu.matmul %46, %46, %cst_16 {dimension_numbers = #tpu.dot_dimension_numbers<[1], [1], [0], [0], [0, 0, 1, 0], [], []>} : vector<8x32xf32>, vector<8x32xf32>, vector<8x8xf32> -> vector<8x8xf32>
      %48 = tpu.iota {dimensions = array<i32: 0>} : vector<8x8xi32>
      %49 = tpu.iota {dimensions = array<i32: 1>} : vector<8x8xi32>
      %50 = arith.cmpi eq, %48, %49 : vector<8x8xi32>
      %51 = arith.extui %50 : vector<8x8xi1> to vector<8x8xi32>
      %52 = arith.sitofp %51 : vector<8x8xi32> to vector<8x8xf32>
      %53 = arith.mulf %47, %52 : vector<8x8xf32>
      %cst_17 = arith.constant dense<0.000000e+00> : vector<8xf32>
      %54 = vector.multi_reduction <add>, %53, %cst_17 [1] : vector<8x8xf32> to vector<8xf32>
      %55 = vector.shape_cast %54 : vector<8xf32> to vector<8x1xf32>
      %cst_18 = arith.constant dense<0.000000e+00> : vector<8xf32>
      %56 = vector.multi_reduction <add>, %53, %cst_18 [0] : vector<8x8xf32> to vector<8xf32>
      %57 = vector.shape_cast %56 : vector<8xf32> to vector<1x8xf32>
      %58 = vector.broadcast %55 : vector<8x1xf32> to vector<8x8xf32>
      %59 = vector.broadcast %57 : vector<1x8xf32> to vector<8x8xf32>
      %60 = arith.addf %58, %59 : vector<8x8xf32>
      %cst_19 = arith.constant 2.000000e+00 : f32
      %61 = vector.broadcast %cst_19 : f32 to vector<8x8xf32>
      %62 = arith.mulf %61, %47 : vector<8x8xf32>
      %63 = arith.subf %60, %62 : vector<8x8xf32>
      %c0_20 = arith.constant 0 : index
      %c0_21 = arith.constant 0 : index
      %64 = vector.load %arg5[%c0_20, %c0_21] : memref<8x8xf32, #tpu.memory_space<vmem>>, vector<8x8xf32>
      tpu.vector_store %arg5[%c0_20, %c0_21], %63 {strides = array<i32>} : memref<8x8xf32, #tpu.memory_space<vmem>>, vector<8x8xf32>,
      %cst_22 = arith.constant 0.000000e+00 : f32
      %65 = vector.broadcast %cst_22 : f32 to vector<1x512xf32>
      %c0_23 = arith.constant 0 : index
      %c0_24 = arith.constant 0 : index
      %66 = vector.load %arg6[%c0_23, %c0_24] : memref<1x512xf32, #tpu.memory_space<vmem>>, vector<1x512xf32>
      tpu.vector_store %arg6[%c0_23, %c0_24], %65 {strides = array<i32>} : memref<1x512xf32, #tpu.memory_space<vmem>>, vector<1x512xf32>,
    } else {
    }
    %c0 = arith.constant 0 : index
    %c0_1 = arith.constant 0 : index
    %3 = vector.load %arg2[%c0, %c0_1] : memref<3x512xi32, #tpu.memory_space<vmem>>, vector<3x512xi32>
    %4 = vector.extract_strided_slice %3 {offsets = [0, 0], sizes = [1, 512], strides = [1, 1]} : vector<3x512xi32> to vector<1x512xi32>
    %5 = vector.extract_strided_slice %3 {offsets = [1, 0], sizes = [1, 512], strides = [1, 1]} : vector<3x512xi32> to vector<1x512xi32>
    %6 = vector.extract_strided_slice %3 {offsets = [2, 0], sizes = [1, 512], strides = [1, 1]} : vector<3x512xi32> to vector<1x512xi32>
    %7 = tpu.iota {dimensions = array<i32: 0>} : vector<8x512xi32>
    %8 = vector.broadcast %4 : vector<1x512xi32> to vector<8x512xi32>
    %9 = arith.cmpi eq, %7, %8 : vector<8x512xi32>
    %10 = arith.extui %9 : vector<8x512xi1> to vector<8x512xi32>
    %11 = arith.sitofp %10 : vector<8x512xi32> to vector<8x512xf32>
    %12 = vector.broadcast %5 : vector<1x512xi32> to vector<8x512xi32>
    %13 = arith.cmpi eq, %7, %12 : vector<8x512xi32>
    %14 = arith.extui %13 : vector<8x512xi1> to vector<8x512xi32>
    %15 = arith.sitofp %14 : vector<8x512xi32> to vector<8x512xf32>
    %16 = vector.broadcast %6 : vector<1x512xi32> to vector<8x512xi32>
    %17 = arith.cmpi eq, %7, %16 : vector<8x512xi32>
    %18 = arith.extui %17 : vector<8x512xi1> to vector<8x512xi32>
    %19 = arith.sitofp %18 : vector<8x512xi32> to vector<8x512xf32>
    %20 = arith.subf %15, %19 : vector<8x512xf32>
    %c0_2 = arith.constant 0 : index
    %c0_3 = arith.constant 0 : index
    %21 = vector.load %arg5[%c0_2, %c0_3] : memref<8x8xf32, #tpu.memory_space<vmem>>, vector<8x8xf32>
    %cst = arith.constant dense<0.000000e+00> : vector<8x512xf32>
    %22 = tpu.matmul %21, %11, %cst {dimension_numbers = #tpu.dot_dimension_numbers<[1], [0], [0], [1], [0, 0, 1, 1], [], []>} : vector<8x8xf32>, vector<8x512xf32>, vector<8x512xf32> -> vector<8x512xf32>
    %23 = arith.mulf %22, %20 : vector<8x512xf32>
    %cst_4 = arith.constant dense<0.000000e+00> : vector<512xf32>
    %24 = vector.multi_reduction <add>, %23, %cst_4 [0] : vector<8x512xf32> to vector<512xf32>
    %25 = vector.shape_cast %24 : vector<512xf32> to vector<1x512xf32>
    %c512_i32 = arith.constant 512 : i32
    %26 = arith.muli %arg0, %c512_i32 : i32
    %27 = tpu.iota {dimensions = array<i32: 1>} : vector<1x512xi32>
    %28 = vector.broadcast %26 : i32 to vector<1x512xi32>
    %29 = arith.addi %28, %27 : vector<1x512xi32>
    %c0_5 = arith.constant 0 : index
    %30 = memref.load %arg1[%c0_5] : memref<1xi32, #tpu.memory_space<smem>>
    %31 = vector.broadcast %30 : i32 to vector<1x512xi32>
    %32 = arith.cmpi slt, %29, %31 : vector<1x512xi32>
    %33 = arith.extui %32 : vector<1x512xi1> to vector<1x512xi32>
    %34 = arith.sitofp %33 : vector<1x512xi32> to vector<1x512xf32>
    %c0_6 = arith.constant 0 : index
    %c0_7 = arith.constant 0 : index
    %35 = vector.load %arg6[%c0_6, %c0_7] : memref<1x512xf32, #tpu.memory_space<vmem>>, vector<1x512xf32>
    %cst_8 = arith.constant 1.000000e+00 : f32
    %36 = vector.broadcast %cst_8 : f32 to vector<1x512xf32>
    %37 = arith.addf %25, %36 : vector<1x512xf32>
    %cst_9 = arith.constant 0.000000e+00 : f32
    %38 = vector.broadcast %cst_9 : f32 to vector<1x512xf32>
    %39 = arith.maximumf %37, %38 : vector<1x512xf32>
    %40 = arith.mulf %39, %34 : vector<1x512xf32>
    %41 = arith.addf %35, %40 : vector<1x512xf32>
    %c0_10 = arith.constant 0 : index
    %c0_11 = arith.constant 0 : index
    %42 = vector.load %arg6[%c0_10, %c0_11] : memref<1x512xf32, #tpu.memory_space<vmem>>, vector<1x512xf32>
    tpu.vector_store %arg6[%c0_10, %c0_11], %41 {strides = array<i32>} : memref<1x512xf32, #tpu.memory_space<vmem>>, vector<1x512xf32>,
    %c0_i32_12 = arith.constant 0 : i32
    %43 = arith.cmpi eq, %arg0, %c0_i32_12 : i32
    %44 = arith.extui %43 : i1 to i32
    %c0_i32_13 = arith.constant 0 : i32
    %45 = arith.cmpi ne, %44, %c0_i32_13 : i32
    scf.if %45 {
      %c0_14 = arith.constant 0 : index
      %c0_15 = arith.constant 0 : index
      %46 = vector.load %arg6[%c0_14, %c0_15] : memref<1x512xf32, #tpu.memory_space<vmem>>, vector<1x512xf32>
      %cst_16 = arith.constant dense<0.000000e+00> : vector<1xf32>
      %47 = vector.multi_reduction <add>, %46, %cst_16 [1] : vector<1x512xf32> to vector<1xf32>
      %48 = vector.shape_cast %47 : vector<1xf32> to vector<1x1xf32>
      %c0_17 = arith.constant 0 : index
      %49 = memref.load %arg1[%c0_17] : memref<1xi32, #tpu.memory_space<smem>>
      %50 = arith.sitofp %49 : i32 to f32
      %51 = vector.broadcast %50 : f32 to vector<1x1xf32>
      %52 = arith.divf %48, %51 : vector<1x1xf32>
      %c0_18 = arith.constant 0 : index
      %c0_19 = arith.constant 0 : index
      %53 = vector.load %arg4[%c0_18, %c0_19] : memref<1x1xf32, #tpu.memory_space<vmem>>, vector<1x1xf32>
      tpu.vector_store %arg4[%c0_18, %c0_19], %52 {strides = array<i32>} : memref<1x1xf32, #tpu.memory_space<vmem>>, vector<1x1xf32>,
    } else {
    }
    return
  }
  func.func @transform_0(%arg0: i32, %arg1: memref<1xi32, #tpu.memory_space<smem>>) -> (i32, i32) {
    %c0_i32 = arith.constant 0 : i32
    %c0_i32_0 = arith.constant 0 : i32
    return %c0_i32, %arg0 : i32, i32
  }
  func.func @transform_1(%arg0: i32, %arg1: memref<1xi32, #tpu.memory_space<smem>>) -> (i32, i32) {
    %c0_i32 = arith.constant 0 : i32
    %c0_i32_0 = arith.constant 0 : i32
    %c0_i32_1 = arith.constant 0 : i32
    return %c0_i32, %c0_i32_0 : i32, i32
  }
  func.func @transform_2(%arg0: i32, %arg1: memref<1xi32, #tpu.memory_space<smem>>) -> (i32, i32) {
    %c0_i32 = arith.constant 0 : i32
    %c0_i32_0 = arith.constant 0 : i32
    %c0_i32_1 = arith.constant 0 : i32
    return %c0_i32, %c0_i32_0 : i32, i32
  }
}

</mosaic_0001>

<bundles_post_ra>
// kernel: tpu_custom_call.1
= control target key start
LH: loop header
LB: loop body
LE: loop exit
PB: predicated region body
PF: predicated region fallthrough
CT: control target
= control target key end

     0   :  { %9 = vsyncpa [#allocation7], 0  ;;  %s826_s0 = inlined_call_operand.<no memory space> [shape: s32[1], index: 0, kind: input, shape index: {}]   ;;  %s827_s1 = inlined_call_operand.hbm [shape: s32[3,512], index: 1, kind: input, shape index: {}]   ;;  %s828_s2 = inlined_call_operand.hbm [shape: f32[8,32], index: 2, kind: input, shape index: {}]   ;;  %s829_s3 = inlined_call_operand.hbm [shape: f32[1,1], index: 3, kind: output, shape index: {}]  }
   0x1   :  { %10 = vsyncpa [#allocation10], 0 }
   0x2   :  { %11 = vsyncpa [#allocation8], 0  ;;  %s697_s12 = smov [#allocation6]   ;;  %s698_s14 = smov [#allocation9]  }
   0x3   :  { %s18_s13 = sshll.u32 %s697_s12, 4  ;;  %s28_s15 = sshll.u32 %s698_s14, 4  ;;  %s19_s13 = int_to_ptr.vmem [resolvable:$true] %s18_s13  ;;  %s29_s15 = int_to_ptr.vmem [resolvable:$true] %s28_s15 }
   0x4   :  { %s639_s16 = scalar_lea.vmem %s19_s13, 256  ;;  %p644_p1 = scmp.lt.s32.totalorder %s19_s13, %s19_s13 }
   0x5   :  { %p640_p0 = scmp.ne.s32.totalorder %s19_s13, %s639_s16  ;;  %p645_p2 = scmp.lt.s32.totalorder %s639_s16, %s639_s16 }
   0x7   :  { %p646_p3 = por %p645_p2, %p644_p1 }
   0x9   :  { %p647_p4 = pnand %p646_p3, %p640_p0 }
   0xb   :  { %650 = shalt.err (!%p647_p4)
}
   0xc   :  { %21 = dma.hbm_to_vmem [thread:$0]  %s827_s1, 256, %s19_s13, [#allocation7]  }
   0xd   :  { %s659_s19 = scalar_lea.vmem %s29_s15, 128  ;;  %p664_p6 = scmp.lt.s32.totalorder %s29_s15, %s29_s15 }
   0xe   :  { %p660_p5 = scmp.ne.s32.totalorder %s29_s15, %s659_s19  ;;  %p665_p7 = scmp.lt.s32.totalorder %s659_s19, %s659_s19 }
  0x10   :  { %p666_p8 = por %p665_p7, %p664_p6 }
  0x12   :  { %p667_p9 = pnand %p666_p8, %p660_p5 }
  0x14   :  { %670 = shalt.err (!%p667_p9)
}
  0x15   :  { %31 = dma.hbm_to_vmem [thread:$0]  %s828_s2, 128, %s29_s15, [#allocation10]  }
  0x16   :  { %691 = dma.done.wait [#allocation7], 256  }
  0x17   :  { %692 = vsyncadd [#allocation7], 4294967040 }
  0x18   :  { %693 = dma.done.wait [#allocation10], 128  }
  0x19   :  { %694 = vsyncadd [#allocation10], 4294967168  ;;  %v699_v0 = vmov 0.0   ;;  %vm700_vm0 = vmmov 0   ;;  %vm43_vm1 = vcmask 261120   ;;  %v42_v1 = vld [vmem:[#allocation9] sm:$0xff]  ;;  %v117_v2 = vlaneseq  ;;  %s568_s24 = scvt.s32.f32 %s826_s0 }
  0x1a   :  { %617 = vmatprep.subr.mxu0 %v699_v0  ;;  %619 = vmatprep.mubr.msk.f32.mxu0 %vm700_vm0, %v699_v0  ;;  %vm125_vm4 = vcmask 64512   ;;  %v144_v12 = vld [vmem:[#allocation6] sm:$0x77]  ;;  %v145_v14 = vld [vmem:[#allocation6 + $0x8] sm:$0x77]  ;;  %v701_v21 = vmov 1.0  }
  0x1b   :  { %353 = vmatprep.mubr.f32.mxu1 %v699_v0  ;;  %618 = vmatpush3.xpose.msk.msra.mxu0 %vm43_vm1, %v42_v1  ;;  %vm733_vm2 = vcmp.lt.s32.totalorder %v117_v2, 512  ;;  %v740_v4 = vshrl.u32 %v117_v2, 7  ;;  %v742_v5 = vand.u32 127, %v117_v2  ;;  %v569_v3 = vstv %s568_s24  ;;  %s703_s25 = smov [#allocation11]  }
  0x1c   :  { %143 = vst.msk [vmem:[#allocation3] sm:$0xf] %vm733_vm2, %v699_v0  ;;  %629 = vrcp.f32 %v569_v3  ;;  %s580_s26 = sshll.u32 %s703_s25, 4  ;;  %s581_s26 = int_to_ptr.vmem [resolvable:$true] %s580_s26 }
  0x1d   :  { %vm121_vm3 = vcmp.eq.s32.totalorder %v740_v4, %v742_v5  ;;  %v154_v11 = vsub.s32 4, %v740_v4  ;;  %v750_v13 = vsub.s32 0, %v740_v4  ;;  %v767_v35 = vsub.s32 1, %v740_v4  ;;  %s671_s27 = scalar_lea.vmem %s581_s26, 16  ;;  %s675_s28 = scalar_lea.vmem %s581_s26, 32 }
  0x1e   :  { %620 = vmatmul.mubr.msk.f32.vlgmr.msra.gmra.mxu0 %vm43_vm1, %v42_v1  ;;  %v592_v6 = vsel %vm121_vm3, 1.0, %v699_v0  ;;  %v770_v36 = vsub.s32 2, %v740_v4  ;;  %v198_v37 = vsub.s32 5, %v740_v4  ;;  %v242_v38 = vsub.s32 6, %v740_v4  ;;  %p672_p10 = scmp.ne.s32.totalorder %s581_s26, %s671_s27  ;;  %p676_p11 = scmp.lt.s32.totalorder %s581_s26, %s581_s26 }
  0x1f   :  { %v155_v15 = vrot.slane %v144_v12, %v154_v11  ;;  %v163_v16 = vrot.slane %v145_v14, %v154_v11  ;;  %v151_v17 = vrot.slane %v144_v12, %v750_v13  ;;  %v159_v32 = vrot.slane %v145_v14, %v750_v13  ;;  %p677_p12 = scmp.lt.s32.totalorder %s675_s28, %s671_s27 }
  0x20   :  { %v195_v39 = vrot.slane %v144_v12, %v767_v35  ;;  %v239_v40 = vrot.slane %v144_v12, %v770_v36  ;;  %v199_v41 = vrot.slane %v144_v12, %v198_v37  ;;  %v243_v42 = vrot.slane %v144_v12, %v242_v38 }
  0x21   :  { %v171_v18 = vrot.slane %v155_v15, %v750_v13  ;;  %v179_v19 = vrot.slane %v163_v16, %v750_v13  ;;  %v167_v20 = vrot.slane %v151_v17, %v750_v13  ;;  %v175_v33 = vrot.slane %v159_v32, %v750_v13  ;;  %p678_p13 = por %p677_p12, %p676_p11 }
  0x22   :  { %v211_v43 = vrot.slane %v195_v39, %v767_v35  ;;  %v255_v44 = vrot.slane %v239_v40, %v770_v36  ;;  %v203_v45 = vrot.slane %v145_v14, %v767_v35  ;;  %v247_v46 = vrot.slane %v145_v14, %v770_v36 }
  0x23   :  { %vm181_vm5 = vcmp.eq.s32.totalorder %v740_v4, %v171_v18  ;;  %vm183_vm6 = vcmp.eq.s32.totalorder %v740_v4, %v179_v19  ;;  %vm180_vm7 = vcmp.eq.s32.totalorder %v740_v4, %v167_v20  ;;  %vm182_vm8 = vcmp.eq.s32.totalorder %v740_v4, %v175_v33  ;;  %p679_p0 = pnand %p678_p13, %p672_p10 }
  0x24   :  { %605 = vmatprep.subr.msk.mxu1 %vm181_vm5, %v701_v21  ;;  %v215_v47 = vrot.slane %v199_v41, %v767_v35  ;;  %v259_v48 = vrot.slane %v243_v42, %v770_v36  ;;  %v207_v49 = vrot.slane %v145_v14, %v198_v37  ;;  %v251_v50 = vrot.slane %v145_v14, %v242_v38 }
  0x25   :  { %606 = vmatpush1.msk.msra.mxu1 %vm180_vm7, %v701_v21  ;;  %vm224_vm9 = vcmp.eq.s32.totalorder %v740_v4, %v211_v43  ;;  %vm268_vm10 = vcmp.eq.s32.totalorder %v740_v4, %v255_v44  ;;  %v219_v51 = vrot.slane %v203_v45, %v767_v35  ;;  %v263_v52 = vrot.slane %v247_v46, %v770_v36 }
  0x26   :  { %608 = vmatprep.subr.msk.mxu1 %vm183_vm6, %v701_v21  ;;  %vm225_vm11 = vcmp.eq.s32.totalorder %v740_v4, %v215_v47  ;;  %vm269_vm12 = vcmp.eq.s32.totalorder %v740_v4, %v259_v48  ;;  %v223_v53 = vrot.slane %v207_v49, %v767_v35  ;;  %v267_v54 = vrot.slane %v251_v50, %v770_v36 }
  0x27   :  { %v597_v55 = vsel %vm224_vm9, 1.0, %v699_v0  ;;  %v601_v56 = vsel %vm268_vm10, 1.0, %v699_v0  ;;  %vm226_vm13 = vcmp.eq.s32.totalorder %v740_v4, %v219_v51  ;;  %vm270_vm14 = vcmp.eq.s32.totalorder %v740_v4, %v263_v52 }
  0x28   :  { %v598_v57 = vsel %vm225_vm11, 1.0, %v699_v0  ;;  %v602_v58 = vsel %vm269_vm12, 1.0, %v699_v0  ;;  %v280_v59 = vsub.f32 %v597_v55, %v601_v56  ;;  %vm227_vm15 = vcmp.eq.s32.totalorder %v740_v4, %v223_v53 }
  0x29   :  { %vm271_vm0 = vcmp.eq.s32.totalorder %v740_v4, %v267_v54  ;;  %v599_v60 = vsel %vm226_vm13, 1.0, %v699_v0  ;;  %v603_v61 = vsel %vm270_vm14, 1.0, %v699_v0  ;;  %v281_v62 = vsub.f32 %v598_v57, %v602_v58 }
  0x2a   :  { %v600_v1 = vsel %vm227_vm15, 1.0, %v699_v0  ;;  %v604_v2 = vsel %vm271_vm0, 1.0, %v699_v0  ;;  %v463_v38 = vadd.s32 256, %v742_v5  ;;  %v464_v39 = vadd.s32 384, %v742_v5 }
  0x2b   :  { %v283_v11 = vsub.f32 %v600_v1, %v604_v2  ;;  %v702_v45 = vmov 1966171168   ;;  %vm557_vm6 = vcmask 1040384  }
  0x2c   :  { %v504_v46 = vunpack.c.l.s4 %v702_v45 }
  0x2e   :  { %v505_v56 = vunpack.c.0.s8 %v504_v46 }
  0xde   :  { %v113_v7 = vpop.f32.mrf.mxu0 }
  0xdf   :  { %v124_v8 = vmul.f32 %v592_v6, %v113_v7  ;;  %v136_v29 = vmul.f32 2.0, %v113_v7  ;;  %v282_v7 = vsub.f32 %v599_v60, %v603_v61 }
  0xe0   :  { %v621_v9 = vpop.f32.mrf.mxu0 }
  0xe1   :  { %v126_v10 = vsel %vm125_vm4, %v124_v8, 0.0 }
  0xe2   :  { %127 = vadd.xlane.f32.xlu0 %v126_v10  ;;  %v129_v22 = vrot.slane %v126_v10, 4 }
  0xe4   :  { %v130_v23 = vadd.f32 %v129_v22, %v126_v10 }
  0xe6   :  { %v131_v24 = vrot.slane %v130_v23, 2 }
  0xe8   :  { %v132_v25 = vadd.f32 %v131_v24, %v130_v23 }
  0xea   :  { %v133_v26 = vrot.slane %v132_v25, 1 }
  0xec   :  { %v134_v27 = vadd.f32 %v133_v26, %v132_v25  ;;  %v462_v26 = vadd.s32 128, %v742_v5 }
 0x16b   :  { %v128_v28 = vpop.xlane.xlu0 %127 }
 0x16c   :  { %v135_v30 = vadd.f32 %v134_v27, %v128_v28 }
 0x16e   :  { %v137_v31 = vsub.f32 %v135_v30, %v136_v29 }
 0x170   :  { %138 = vst.msk [vmem:[#allocation2] sm:$0xff] %vm125_vm4, %v137_v31  ;;  %v471_v31 = vstv %s826_s0 }
 0x171   :  { %vm473_vm1 = vcmp.lt.s32.totalorder %v462_v26, %v471_v31  ;;  %vm472_vm3 = vcmp.lt.s32.totalorder %v742_v5, %v471_v31  ;;  %vm475_vm5 = vcmp.lt.s32.totalorder %v464_v39, %v471_v31 }
 0x172   :  { %v612_v49 = vsel %vm473_vm1, 1.0, %v699_v0  ;;  %v611_v54 = vsel %vm472_vm3, 1.0, %v699_v0 }
 0x177   :  { %v284_v34 = vld [vmem:[#allocation2] sm:$0xff] }
 0x178   :  { %607 = vmatmul.mubr.msk.f32.vlgmr.msra.gmra.mxu1 %vm125_vm4, %v284_v34 }
 0x179   :  { %609 = vmatpush1.msk.msra.mxu1 %vm182_vm8, %v701_v21  ;;  %424 = vmatprep.mubr.f32.mxu1 %v699_v0 }
 0x17c   :  { %610 = vmatmul.mubr.msk.f32.vlgmr.msra.gmra.mxu1 %vm125_vm4, %v284_v34  ;;  %vm474_vm4 = vcmp.lt.s32.totalorder %v463_v38, %v471_v31 }
 0x17d   :  { %v613_v5 = vsel %vm474_vm4, 1.0, %v699_v0 }
 0x238   :  { %v355_v63 = vpop.f32.mrf.mxu1 }
 0x239   :  { %v431_v6 = vmul.f32 %v355_v63, %v280_v59  ;;  %v614_v59 = vsel %vm475_vm5, 1.0, %v699_v0  ;;  %v508_v63 = vsub.s32 %v505_v56, %v740_v4 }
 0x23a   :  { %v357_v8 = vpop.f32.mrf.mxu1 }
 0x23b   :  { %v435_v9 = vrot.slane %v431_v6, 4  ;;  %v432_v10 = vmul.f32 %v357_v8, %v281_v62 }
 0x23c   :  { %v426_v12 = vpop.f32.mrf.mxu1 }
 0x23d   :  { %v436_v14 = vadd.f32 %v435_v9, %v431_v6  ;;  %v441_v15 = vrot.slane %v432_v10, 4  ;;  %v433_v16 = vmul.f32 %v426_v12, %v282_v7 }
 0x23e   :  { %v428_v17 = vpop.f32.mrf.mxu1 }
 0x23f   :  { %v437_v18 = vrot.slane %v436_v14, 2  ;;  %v442_v19 = vadd.f32 %v441_v15, %v432_v10  ;;  %v447_v20 = vrot.slane %v433_v16, 4  ;;  %v434_v21 = vmul.f32 %v428_v17, %v283_v11  ;;  %v484_v10 = vld [vmem:[#allocation3] sm:$0xf] }
 0x241   :  { %v438_v22 = vadd.f32 %v437_v18, %v436_v14  ;;  %v443_v23 = vrot.slane %v442_v19, 2  ;;  %v448_v24 = vadd.f32 %v447_v20, %v433_v16  ;;  %v453_v25 = vrot.slane %v434_v21, 4 }
 0x242   :  { %v551_v14 = vsub.s32 3, %v740_v4  ;;  %v630_v4 = vpop.eup %629 }
 0x243   :  { %v439_v27 = vrot.slane %v438_v22, 1  ;;  %v444_v28 = vadd.f32 %v443_v23, %v442_v19  ;;  %v449_v29 = vrot.slane %v448_v24, 2  ;;  %v454_v30 = vadd.f32 %v453_v25, %v434_v21 }
 0x245   :  { %v440_v32 = vadd.f32 %v439_v27, %v438_v22  ;;  %v445_v33 = vrot.slane %v444_v28, 1  ;;  %v450_v34 = vadd.f32 %v449_v29, %v448_v24  ;;  %v455_v37 = vrot.slane %v454_v30, 2 }
 0x247   :  { %v485_v40 = vadd.f32 1.0, %v440_v32  ;;  %v446_v41 = vadd.f32 %v445_v33, %v444_v28  ;;  %v451_v42 = vrot.slane %v450_v34, 1  ;;  %v456_v43 = vadd.f32 %v455_v37, %v454_v30 }
 0x249   :  { %v486_v44 = vadd.f32 1.0, %v446_v41  ;;  %v452_v47 = vadd.f32 %v451_v42, %v450_v34  ;;  %v457_v48 = vrot.slane %v456_v43, 1  ;;  %v489_v50 = vmax.f32 %v485_v40, 0.0 }
 0x24b   :  { %v490_v51 = vmax.f32 %v486_v44, 0.0  ;;  %v487_v52 = vadd.f32 1.0, %v452_v47  ;;  %v458_v53 = vadd.f32 %v457_v48, %v456_v43  ;;  %v493_v60 = vmul.f32 %v611_v54, %v489_v50 }
 0x24d   :  { %v494_v55 = vmul.f32 %v612_v49, %v490_v51  ;;  %v491_v57 = vmax.f32 %v487_v52, 0.0  ;;  %v488_v58 = vadd.f32 1.0, %v458_v53 }
 0x24f   :  { %v492_v61 = vmax.f32 %v488_v58, 0.0  ;;  %v501_v62 = vcombine.low %v493_v60, %v494_v55  ;;  %v495_v1 = vmul.f32 %v613_v5, %v491_v57 }
 0x251   :  { %v496_v2 = vmul.f32 %v614_v59, %v492_v61  ;;  %v509_v7 = vrot.slane %v501_v62, %v508_v63 }
 0x253   :  { %v502_v6 = vcombine.low %v495_v1, %v496_v2 }
 0x255   :  { %v516_v8 = vrot.slane %v502_v6, %v508_v63 }
 0x257   :  { %v517_v9 = vcombine.low %v509_v7, %v516_v8 }
 0x259   :  { %v524_v11 = vrot.slane %v517_v9, %v508_v63 }
 0x25b   :  { %v526_v12 = vadd.f32 %v524_v11, %v484_v10 }
 0x25d   :  { %531 = vst.msk [vmem:[#allocation3] sm:$0xf] %vm733_vm2, %v526_v12  ;;  %vm572_vm2 = vcmask 0  }
 0x264   :  { %v535_v0 = vld [vmem:[#allocation3] sm:$0xf] }
 0x265   :  { %v540_v15 = vrot.slane %v535_v0, %v750_v13  ;;  %v544_v16 = vrot.slane %v535_v0, %v767_v35  ;;  %v548_v17 = vrot.slane %v535_v0, %v770_v36  ;;  %v552_v18 = vrot.slane %v535_v0, %v551_v14 }
 0x267   :  { %v558_v19 = vsel %vm557_vm6, %v540_v15, 0.0  ;;  %v559_v20 = vsel %vm557_vm6, %v544_v16, 0.0  ;;  %v561_v22 = vsel %vm557_vm6, %v548_v17, 0.0  ;;  %v563_v24 = vsel %vm557_vm6, %v552_v18, 0.0 }
 0x268   :  { %v560_v21 = vadd.f32 %v559_v20, %v558_v19 }
 0x26a   :  { %v562_v23 = vadd.f32 %v561_v22, %v560_v21 }
 0x26c   :  { %v564_v25 = vadd.f32 %v563_v24, %v562_v23 }
 0x26e   :  { %565 = vadd.xlane.f32.xlu0 %v564_v25 }
 0x2f7   :  { %v566_v13 = vpop.xlane.xlu0 %565 }
 0x2f8   :  { %v571_v35 = vmul.f32 %v630_v4, %v566_v13 }
 0x2fa   :  { %573 = vst.msk [vmem:[#allocation11] sm:$0x1] %vm572_vm2, %v571_v35 }
 0x2fb   :  { %682 = shalt.err (!%p679_p0)
}
 0x2fc   :  { %583 = dma.vmem_to_hbm [thread:$0]  %s581_s26, 16, %s829_s3, [#allocation8]  }
 0x2fd   :  { %695 = dma.done.wait [#allocation8], 16  }
 0x2fe   :  { %696 = vsyncadd [#allocation8], 4294967280 }
 0x2ff   :  { %587 = vsyncpa [#allocation7], 1 }
 0x300   :  { %588 = vsyncpa [#allocation10], 1 }
 0x301   :  { %589 = vsyncpa [#allocation8], 1 }

</bundles_post_ra>
